<compile_context>
chip_gen: v5e
topology: v5e:2x2
jax: 0.10.0
libtpu: 0.0.40
codegen_flags: <defaults>
</compile_context>

<pallas_src>
import math
import functools

import jax
import jax.numpy as jnp
from jax.experimental import pallas as pl
from jax.experimental.pallas import tpu as pltpu


def _build_pe_table(d_model: int, max_seq_len: int) -> jnp.ndarray:
    """Deterministic sinusoidal table, identical to the PyTorch __init__ loop."""
    assert d_model % 2 == 0, "d_model must be even (matches the PyTorch module)"
    pos = jnp.arange(max_seq_len, dtype=jnp.float32)[:, None]          # (S, 1)
    i = jnp.arange(0, d_model, 2, dtype=jnp.float32)[None, :]          # (1, D/2)
    div = jnp.power(10000.0, i / d_model)                              # (1, D/2)
    angles = pos / div                                                  # (S, D/2)
    pe = jnp.zeros((max_seq_len, d_model), dtype=jnp.float32)
    pe = pe.at[:, 0::2].set(jnp.sin(angles))
    pe = pe.at[:, 1::2].set(jnp.cos(angles))
    return pe                                                           # (max_seq_len, d_model)


def _vmem_capacity_bytes(default: int = 64 * 1024 * 1024) -> int:
    """VMEM capacity for the current chip; conservative 64 MiB fallback (v7x)."""
    try:
        return int(pltpu.get_tpu_info().vmem_capacity_bytes)
    except Exception:
        return default


def _sublane_multiple(dtype) -> int:
    """Sublane packing factor: 8 for f32, 16 for bf16, 32 for int8/fp8."""
    return max(8, 32 // max(1, jnp.dtype(dtype).itemsize))


def _pos_enc_kernel(x_ref, pe_ref, o_ref, *, scale):
    # Works for both paths (f32 accumulate regardless of streaming dtype):
    #   wide:   x_ref (1, TS, D), pe_ref (1, TS, D), o_ref (1, TS, D)
    #   narrow: x_ref (TB, TC),   pe_ref (1, TC),    o_ref (TB, TC)  (sublane bcast)
    o_ref[...] = (x_ref[...].astype(jnp.float32) * scale
                  + pe_ref[...].astype(jnp.float32)).astype(o_ref.dtype)


def positional_encoder(x: jnp.ndarray,
                       pe_table: jnp.ndarray,
                       d_model: int,
                       *,
                       vmem_limit_bytes: int | None = None,
                       min_pallas_bytes: int = 1 << 20) -> jnp.ndarray:
    """x: (B, S, D); pe_table: (max_seq_len, D) float32. Returns (B, S, D)."""
    b, s, d = x.shape
    assert d == d_model
    assert pe_table.shape[0] >= s and pe_table.shape[1] == d

    scale = float(math.sqrt(d_model))
    itemsize = jnp.dtype(x.dtype).itemsize

    # Stream pe in x's dtype (bf16 pe for bf16 x -> halves pe HBM traffic);
    # the kernel still accumulates in f32.
    pe_dtype = x.dtype if jnp.issubdtype(x.dtype, jnp.floating) else jnp.float32
    pe = pe_table[:s].astype(pe_dtype)                    # like pe[:, :seq_len]
    pe_itemsize = jnp.dtype(pe_dtype).itemsize

    # --- Tiny-input fast path: fused XLA elementwise beats any pallas_call. ---
    if b * s * d * itemsize < min_pallas_bytes:
        return (x.astype(jnp.float32) * scale
                + pe.astype(jnp.float32)[None]).astype(x.dtype)

    # --- Generation-aware byte budgets. ---
    vmem_cap = _vmem_capacity_bytes()
    # Per-(x/out)-tile budget; wide-path pipeline footprint is ~6 such tiles
    # (x, pe, out, each double-buffered) -> ~60% of VMEM.
    tile_budget = max(1 << 20, vmem_cap // 10)
    if vmem_limit_bytes is None:
        vmem_limit_bytes = (vmem_cap * 3) // 4            # safe on v7x's 64 MiB too

    kernel = functools.partial(_pos_enc_kernel, scale=scale)
    sub = _sublane_multiple(x.dtype)
    compiler_params = pltpu.CompilerParams(
        dimension_semantics=("parallel", "parallel"),
        vmem_limit_bytes=int(vmem_limit_bytes),
    )
    cost_estimate = pl.CostEstimate(
        flops=2 * b * s * d,
        transcendentals=0,
        bytes_accessed=2 * b * s * d * itemsize + s * d * pe_itemsize,
    )

    if d % 128 == 0:
        # ---- Wide / lane-dense path: tile the sequence dimension. ----
        row_bytes = d * itemsize
        ts = max(sub, (tile_budget // row_bytes) // sub * sub)   # dtype-packed sublanes
        if s <= ts:
            ts = s                                        # full extent is always legal
        pe3 = pe.reshape(1, s, d)                         # like torch's unsqueeze(0)
        seq_tiles = pl.cdiv(s, ts)

        # Put the larger extent on the OUTER (megacore-sharded) axis so both
        # v7x TensorCores get work; with seq tiles outer, the pe tile is also
        # reused across the inner batch loop.
        if seq_tiles >= b:
            grid = (seq_tiles, b)
            x_map = lambda si, bi: (bi, si, 0)
            pe_map = lambda si, bi: (0, si, 0)
        else:
            grid = (b, seq_tiles)
            x_map = lambda bi, si: (bi, si, 0)
            pe_map = lambda bi, si: (0, si, 0)

        return pl.pallas_call(
            kernel,
            out_shape=jax.ShapeDtypeStruct((b, s, d), x.dtype),
            grid_spec=pltpu.PrefetchScalarGridSpec(
                num_scalar_prefetch=0,
                grid=grid,
                in_specs=[
                    pl.BlockSpec((1, ts, d), x_map),
                    pl.BlockSpec((1, ts, d), pe_map),
                ],
                out_specs=pl.BlockSpec((1, ts, d), x_map),
            ),
            compiler_params=compiler_params,
            cost_estimate=cost_estimate,
        )(x, pe3)

    # ---- Narrow-D path (e.g. D=32): fold seq into the lane dim. ----
    c = s * d
    pad = (-c) % 128                                      # lane-dense output slab
    x2 = x.reshape(b, c)
    pe2 = pe.reshape(1, c)
    if pad:
        x2 = jnp.pad(x2, ((0, 0), (0, pad)))
        pe2 = jnp.pad(pe2, ((0, 0), (0, pad)))
    cp = c + pad

    tb = b if b <= sub else sub                           # batch rows per tile
    # Column tile capped by the byte budget (never an unbounded (tb, cp) slab).
    max_tc = max(128, (tile_budget // max(1, tb * itemsize)) // 128 * 128)
    tc = cp if cp <= max_tc else max_tc

    col_tiles = pl.cdiv(cp, tc)
    batch_tiles = pl.cdiv(b, tb)
    if col_tiles >= batch_tiles:
        grid = (col_tiles, batch_tiles)
        x_map = lambda ci, bi: (bi, ci)
        pe_map = lambda ci, bi: (0, ci)
    else:
        grid = (batch_tiles, col_tiles)
        x_map = lambda bi, ci: (bi, ci)
        pe_map = lambda bi, ci: (0, ci)

    out2 = pl.pallas_call(
        kernel,
        out_shape=jax.ShapeDtypeStruct((b, cp), x.dtype),
        grid_spec=pltpu.PrefetchScalarGridSpec(
            num_scalar_prefetch=0,
            grid=grid,
            in_specs=[
                pl.BlockSpec((tb, tc), x_map),
                pl.BlockSpec((1, tc), pe_map),
            ],
            out_specs=pl.BlockSpec((tb, tc), x_map),
        ),
        compiler_params=compiler_params,
        cost_estimate=cost_estimate,
    )(x2, pe2)
    if pad:
        out2 = out2[:, :c]
    return out2.reshape(b, s, d)


if __name__ == "__main__":
    max_seq_len = 80
    batch = 2
    seq_len = 8
    key = jax.random.PRNGKey(0)

    # --- Case 1: narrow D (folded lane-dense path), f32, force Pallas ---
    d_model = 32
    pe_table = _build_pe_table(d_model, max_seq_len)
    x = jax.random.normal(key, (batch, seq_len, d_model), dtype=jnp.float32)
    out = jax.block_until_ready(
        positional_encoder(x, pe_table, d_model, min_pallas_bytes=0))
    ref = x * math.sqrt(d_model) + pe_table[None, :seq_len, :]
    assert out.shape == (batch, seq_len, d_model)
    assert jnp.allclose(out, ref, atol=1e-5, rtol=1e-5)

    # --- Case 2: wide D (seq-tiled 3-D path), f32, force Pallas ---
    d_model2 = 128
    pe_table2 = _build_pe_table(d_model2, max_seq_len)
    key2 = jax.random.fold_in(key, 1)
    x2 = jax.random.normal(key2, (batch, seq_len, d_model2), dtype=jnp.float32)
    out2 = jax.block_until_ready(
        positional_encoder(x2, pe_table2, d_model2, min_pallas_bytes=0))
    ref2 = x2 * math.sqrt(d_model2) + pe_table2[None, :seq_len, :]
    assert out2.shape == (batch, seq_len, d_model2)
    assert jnp.allclose(out2, ref2, atol=1e-5, rtol=1e-5)

    # --- Case 3: wide D, bf16 input (pe streamed in bf16, f32 accumulate) ---
    key3 = jax.random.fold_in(key, 2)
    x3 = jax.random.normal(key3, (batch, seq_len, d_model2),
                           dtype=jnp.float32).astype(jnp.bfloat16)
    out3 = jax.block_until_ready(
        positional_encoder(x3, pe_table2, d_model2, min_pallas_bytes=0))
    pe_bf16 = pe_table2[:seq_len].astype(jnp.bfloat16)
    ref3 = (x3.astype(jnp.float32) * math.sqrt(d_model2)
            + pe_bf16[None].astype(jnp.float32)).astype(jnp.bfloat16)
    assert out3.shape == (batch, seq_len, d_model2)
    assert jnp.allclose(out3.astype(jnp.float32), ref3.astype(jnp.float32),
                        atol=2e-2, rtol=2e-2)

    # --- Case 4: tiny-input dispatch (default threshold -> fused XLA path) ---
    out4 = jax.block_until_ready(positional_encoder(x, pe_table, d_model))
    assert jnp.allclose(out4, ref, atol=1e-5, rtol=1e-5)

    print("KERNEL_OK")
</pallas_src>

<mosaic_0001>
module attributes {stable_mosaic.version = 11 : i64} {
  func.func @_pos_enc_kernel(%arg0: i32, %arg1: i32, %arg2: memref<2x256xf32, #tpu.memory_space<vmem>>, %arg3: memref<1x256xf32, #tpu.memory_space<vmem>>, %arg4: memref<2x256xf32, #tpu.memory_space<vmem>>) attributes {dimension_semantics = [#tpu.dimension_semantics<parallel>, #tpu.dimension_semantics<parallel>], iteration_bounds = array<i64: 1, 1>, scalar_prefetch = 0 : i64, scratch_operands = 0 : i64, tpu.core_type = #tpu.core_type<tc>, window_params = [{transform_indices = @transform_0, window_bounds = array<i64: 2, 256>}, {transform_indices = @transform_1, window_bounds = array<i64: 1, 256>}, {transform_indices = @transform_2, window_bounds = array<i64: 2, 256>}]} {
    %c0 = arith.constant 0 : index
    %c0_0 = arith.constant 0 : index
    %0 = vector.load %arg2[%c0, %c0_0] : memref<2x256xf32, #tpu.memory_space<vmem>>, vector<2x256xf32>
    %cst = arith.constant 5.65685415 : f32
    %1 = vector.broadcast %cst : f32 to vector<2x256xf32>
    %2 = arith.mulf %0, %1 : vector<2x256xf32>
    %c0_1 = arith.constant 0 : index
    %c0_2 = arith.constant 0 : index
    %3 = vector.load %arg3[%c0_1, %c0_2] : memref<1x256xf32, #tpu.memory_space<vmem>>, vector<1x256xf32>
    %4 = vector.broadcast %3 : vector<1x256xf32> to vector<2x256xf32>
    %5 = arith.addf %2, %4 : vector<2x256xf32>
    %c0_3 = arith.constant 0 : index
    %c0_4 = arith.constant 0 : index
    %6 = vector.load %arg4[%c0_3, %c0_4] : memref<2x256xf32, #tpu.memory_space<vmem>>, vector<2x256xf32>
    tpu.vector_store %arg4[%c0_3, %c0_4], %5 {strides = array<i32>} : memref<2x256xf32, #tpu.memory_space<vmem>>, vector<2x256xf32>,
    return
  }
  func.func @transform_0(%arg0: i32, %arg1: i32) -> (i32, i32) {
    %c0_i32 = arith.constant 0 : i32
    return %arg1, %arg0 : i32, i32
  }
  func.func @transform_1(%arg0: i32, %arg1: i32) -> (i32, i32) {
    %c0_i32 = arith.constant 0 : i32
    %c0_i32_0 = arith.constant 0 : i32
    return %c0_i32, %arg0 : i32, i32
  }
  func.func @transform_2(%arg0: i32, %arg1: i32) -> (i32, i32) {
    %c0_i32 = arith.constant 0 : i32
    return %arg1, %arg0 : i32, i32
  }
}

</mosaic_0001>

<bundles_post_ra>
// kernel: tpu_custom_call.1
= control target key start
LH: loop header
LB: loop body
LE: loop exit
PB: predicated region body
PF: predicated region fallthrough
CT: control target
= control target key end

     0   :  { %7 = vsyncpa [#allocation3], 0  ;;  %s178_s0 = inlined_call_operand.hbm [shape: f32[2,256], index: 0, kind: input, shape index: {}]   ;;  %s179_s1 = inlined_call_operand.hbm [shape: f32[1,256], index: 1, kind: input, shape index: {}]   ;;  %s180_s2 = inlined_call_operand.hbm [shape: f32[2,256], index: 2, kind: output, shape index: {}]  }
   0x1   :  { %8 = vsyncpa [#allocation6], 0 }
   0x2   :  { %9 = vsyncpa [#allocation4], 0  ;;  %s15_s11 = sshll.u32 %s178_s0, 4  ;;  %s151_s12 = smov [#allocation2]   ;;  %s16_s11 = int_to_ptr.hbm [resolvable:$true] %s15_s11 }
   0x3   :  { %s17_s13 = sshll.u32 %s151_s12, 4  ;;  %s26_s16 = sshll.u32 %s179_s1, 4  ;;  %s18_s13 = int_to_ptr.vmem [resolvable:$true] %s17_s13  ;;  %s27_s16 = int_to_ptr.hbm [resolvable:$true] %s26_s16 }
   0x4   :  { %20 = dma.hbm_to_vmem [thread:$0]  %s16_s11, 64, %s18_s13, [#allocation3]  }
   0x5   :  { %s152_s17 = smov [#allocation5]  }
   0x6   :  { %s28_s18 = sshll.u32 %s152_s17, 4  ;;  %s29_s18 = int_to_ptr.vmem [resolvable:$true] %s28_s18 }
   0x7   :  { %31 = dma.hbm_to_vmem [thread:$0]  %s27_s16, 32, %s29_s18, [#allocation6]  }
   0x8   :  { %145 = dma.done.wait [#allocation3], 64  }
   0x9   :  { %146 = vsyncadd [#allocation3], 4294967232 }
   0xa   :  { %147 = dma.done.wait [#allocation6], 32  }
   0xb   :  { %148 = vsyncadd [#allocation6], 4294967264  ;;  %v40_v0 = vld [vmem:[#allocation2] sm:$0xf]  ;;  %v42_v1 = vld [vmem:[#allocation5] sm:$0x3] }
   0xc   :  { %v44_v2 = vperm.slane %v42_v1, 0  ;;  %v45_v3 = vperm.slane %v42_v1, 1  ;;  %v41_v4 = vmul.f32 5.656854, %v40_v0  ;;  %vm47_vm0 = vcmask 1041408   ;;  %s153_s0 = smov [#allocation7]  }
   0xd   :  { %s57_s19 = sshll.u32 %s153_s0, 4  ;;  %s59_s21 = sshll.u32 %s180_s2, 4  ;;  %s58_s19 = int_to_ptr.vmem [resolvable:$true] %s57_s19  ;;  %s60_s21 = int_to_ptr.hbm [resolvable:$true] %s59_s21 }
   0xe   :  { %v46_v5 = vrot.slane %v45_v3, 6 }
  0x10   :  { %v48_v6 = vsel %vm47_vm0, %v44_v2, %v46_v5 }
  0x11   :  { %v50_v7 = vadd.f32 %v48_v6, %v41_v4 }
  0x13   :  { %51 = vst [vmem:[#allocation7] sm:$0xf] %v50_v7 }
  0x14   :  { %62 = dma.vmem_to_hbm [thread:$0]  %s58_s19, 64, %s60_s21, [#allocation4]  }
  0x15   :  { %149 = dma.done.wait [#allocation4], 64  }
  0x16   :  { %150 = vsyncadd [#allocation4], 4294967232 }
  0x17   :  { %67 = vsyncpa [#allocation3], 1 }
  0x18   :  { %68 = vsyncpa [#allocation6], 1 }
  0x19   :  { %69 = vsyncpa [#allocation4], 1 }

</bundles_post_ra>
